<compile_context>
chip_gen: v7x
topology: tpu7x:2x2x1
jax: 0.10.0
libtpu: 0.0.40
codegen_flags: <defaults>
</compile_context>

<pallas_src>
import math
import functools

import jax
import jax.numpy as jnp
from jax.experimental import pallas as pl
from jax.experimental.pallas import tpu as pltpu


# ----------------------------- config ---------------------------------------
HIDDEN = 64
NUM_HEADS = 4
NUM_KV_HEADS = 2
HEAD_DIM = HIDDEN // NUM_HEADS          # 16
NUM_KV_GROUPS = NUM_HEADS // NUM_KV_HEADS
ROPE_THETA = 10000.0
BATCH = 2
SEQ = 8

Q_OUT = NUM_HEADS * HEAD_DIM            # 64
KV_OUT = NUM_KV_HEADS * HEAD_DIM        # 32
QKV_OUT = Q_OUT + 2 * KV_OUT            # 128  (Q | K | V, lane-dense)
QKV_EXT = 2 * QKV_OUT                   # 256  (… | rot(Q) | rot(K) | zero-pad)


# ----------------------------- fused kernel ---------------------------------
def _fused_attention_kernel(x_ref, wqkv_ref, wo_ref, cos_ref, sin_ref, mask_ref,
                            o_ref, *, scale, batch, seq):
    # One lane-dense (B*S, 256) MXU matmul yields Q|K|V and rotate_half(Q|K).
    qkv = jnp.dot(x_ref[...], wqkv_ref[...], preferred_element_type=jnp.float32)

    cos = cos_ref[...]                   # (B*S, 128): cos x heads | cos x kv | ones
    sin = sin_ref[...]                   # (B*S, 128): sin x heads | sin x kv | zeros
    # RoPE as one 128-lane-wide elementwise FMA; V lanes pass through (cos=1, sin=0).
    qkv_rope = qkv[:, :QKV_OUT] * cos + qkv[:, QKV_OUT:] * sin     # (B*S, 128)

    wo = wo_ref[...].astype(jnp.float32)                           # (Q_OUT, HIDDEN)

    for b in range(batch):
        qb = qkv_rope[b * seq:(b + 1) * seq, :]                    # (S, 128)
        mask_b = mask_ref[b, 0].astype(jnp.float32)                # (S, S)
        # Transpose the whole roped-K slab once per batch element.
        kbt = qb[:, Q_OUT:Q_OUT + KV_OUT].T                        # (KV_OUT, S)
        out_b = jnp.zeros((seq, HIDDEN), jnp.float32)
        for kv in range(NUM_KV_HEADS):
            k_t = kbt[kv * HEAD_DIM:(kv + 1) * HEAD_DIM, :]        # (D, S)
            v_h = qb[:, Q_OUT + KV_OUT + kv * HEAD_DIM:
                        Q_OUT + KV_OUT + (kv + 1) * HEAD_DIM]      # (S, D)
            for g in range(NUM_KV_GROUPS):
                h = kv * NUM_KV_GROUPS + g                         # repeat_kv order
                q_h = qb[:, h * HEAD_DIM:(h + 1) * HEAD_DIM]       # (S, D)
                scores = jnp.dot(q_h, k_t,
                                 preferred_element_type=jnp.float32) * scale + mask_b
                # softmax in float32 (matches torch softmax(dtype=float32))
                m = jnp.max(scores, axis=-1, keepdims=True)
                e = jnp.exp(scores - m)
                p = e * pl.reciprocal(jnp.sum(e, axis=-1, keepdims=True),
                                      approx=False)
                ctx = jnp.dot(p, v_h, preferred_element_type=jnp.float32)  # (S, D)
                # o_proj folded per head (kills the head-output lane concatenate).
                out_b = out_b + jnp.dot(
                    ctx, wo[h * HEAD_DIM:(h + 1) * HEAD_DIM, :],
                    preferred_element_type=jnp.float32)
        o_ref[b * seq:(b + 1) * seq, :] = out_b.astype(o_ref.dtype)


# ----------------------------- param / table prep ----------------------------
def rope_tables(seq_len, dim, base):
    """torch GRINMoERotaryEmbedding cos/sin caches: shape (S, dim), halves repeated."""
    inv_freq = 1.0 / (base ** (jnp.arange(0, dim, 2, dtype=jnp.float32) / dim))
    t = jnp.arange(seq_len, dtype=jnp.float32)
    freqs = jnp.outer(t, inv_freq)                       # (S, D/2)
    emb = jnp.concatenate([freqs, freqs], axis=-1)       # (S, D)
    return jnp.cos(emb), jnp.sin(emb)


def prepare_params(torch_params):
    """One-time prep: transpose torch-style (out,in) weights, fuse Q|K|V and bake
    the rotate_half permutation into extra weight columns (RoPE becomes pure VPU)."""
    wq_t = torch_params["q_w"].T                         # (HIDDEN, Q_OUT)
    wk_t = torch_params["k_w"].T                         # (HIDDEN, KV_OUT)
    wv_t = torch_params["v_w"].T                         # (HIDDEN, KV_OUT)
    d2 = HEAD_DIM // 2

    def rot_cols(w_t, n_heads):
        # x @ rot_cols(W) == rotate_half applied per-head to (x @ W)
        w = w_t.reshape(HIDDEN, n_heads, HEAD_DIM)
        return jnp.concatenate([-w[..., d2:], w[..., :d2]], axis=-1).reshape(
            HIDDEN, n_heads * HEAD_DIM)

    pad = jnp.zeros((HIDDEN, KV_OUT), wq_t.dtype)        # pad to 256 (full MXU tiles)
    wqkv_ext = jnp.concatenate(
        [wq_t, wk_t, wv_t, rot_cols(wq_t, NUM_HEADS), rot_cols(wk_t, NUM_KV_HEADS),
         pad], axis=1)                                   # (HIDDEN, 256)
    return {"wqkv_ext": wqkv_ext, "wo_t": torch_params["o_w"].T}


# ----------------------------- wrapper ---------------------------------------
@jax.jit
def grinmoe_attention_forward(kernel_params, hidden_states, attention_mask):
    """hidden_states: (B, S, HIDDEN); attention_mask: (B, 1, S, S) additive."""
    B, S, _ = hidden_states.shape
    x2d = hidden_states.reshape(B * S, HIDDEN)

    cos_h, sin_h = rope_tables(S, HEAD_DIM, ROPE_THETA)  # (S, D)
    ones = jnp.ones((S, KV_OUT), jnp.float32)
    zeros = jnp.zeros((S, KV_OUT), jnp.float32)
    cos_row = jnp.concatenate([jnp.tile(cos_h, (1, NUM_HEADS)),
                               jnp.tile(cos_h, (1, NUM_KV_HEADS)), ones], axis=-1)
    sin_row = jnp.concatenate([jnp.tile(sin_h, (1, NUM_HEADS)),
                               jnp.tile(sin_h, (1, NUM_KV_HEADS)), zeros], axis=-1)
    cos128 = jnp.tile(cos_row, (B, 1))                   # (B*S, 128)
    sin128 = jnp.tile(sin_row, (B, 1))                   # (B*S, 128)

    scale = 1.0 / math.sqrt(HEAD_DIM)
    kernel = functools.partial(_fused_attention_kernel, scale=scale, batch=B, seq=S)

    out2d = pl.pallas_call(
        kernel,
        out_shape=jax.ShapeDtypeStruct((B * S, HIDDEN), hidden_states.dtype),
        grid=(1,),
        in_specs=[
            pl.BlockSpec((B * S, HIDDEN), lambda i: (0, 0)),
            pl.BlockSpec((HIDDEN, QKV_EXT), lambda i: (0, 0)),
            pl.BlockSpec((Q_OUT, HIDDEN), lambda i: (0, 0)),
            pl.BlockSpec((B * S, QKV_OUT), lambda i: (0, 0)),
            pl.BlockSpec((B * S, QKV_OUT), lambda i: (0, 0)),
            pl.BlockSpec((B, 1, S, S), lambda i: (0, 0, 0, 0)),
        ],
        out_specs=pl.BlockSpec((B * S, HIDDEN), lambda i: (0, 0)),
        compiler_params=pltpu.CompilerParams(dimension_semantics=("arbitrary",)),
    )(x2d, kernel_params["wqkv_ext"], kernel_params["wo_t"], cos128, sin128,
      attention_mask)
    return out2d.reshape(B, S, HIDDEN)


# ----------------------------- pure-JAX reference ----------------------------
def reference_forward(torch_params, hidden_states, attention_mask):
    B, S, _ = hidden_states.shape
    q = hidden_states @ torch_params["q_w"].T
    k = hidden_states @ torch_params["k_w"].T
    v = hidden_states @ torch_params["v_w"].T
    q = q.reshape(B, S, NUM_HEADS, HEAD_DIM).transpose(0, 2, 1, 3)
    k = k.reshape(B, S, NUM_KV_HEADS, HEAD_DIM).transpose(0, 2, 1, 3)
    v = v.reshape(B, S, NUM_KV_HEADS, HEAD_DIM).transpose(0, 2, 1, 3)

    cos, sin = rope_tables(S, HEAD_DIM, ROPE_THETA)
    cos = cos[None, None].astype(q.dtype)
    sin = sin[None, None].astype(q.dtype)

    def rot_half(x):
        d2 = x.shape[-1] // 2
        return jnp.concatenate([-x[..., d2:], x[..., :d2]], axis=-1)

    q = q * cos + rot_half(q) * sin
    k = k * cos + rot_half(k) * sin

    k = jnp.repeat(k, NUM_KV_GROUPS, axis=1)
    v = jnp.repeat(v, NUM_KV_GROUPS, axis=1)

    scores = jnp.einsum("bhqd,bhkd->bhqk", q, k) / math.sqrt(HEAD_DIM)
    scores = scores + attention_mask
    p = jax.nn.softmax(scores.astype(jnp.float32), axis=-1).astype(q.dtype)
    attn = jnp.einsum("bhqk,bhkd->bhqd", p, v)
    attn = attn.transpose(0, 2, 1, 3).reshape(B, S, HIDDEN)
    return attn @ torch_params["o_w"].T


# ----------------------------- main ------------------------------------------
if __name__ == "__main__":
    key = jax.random.PRNGKey(0)
    kx, kq, kk, kv, ko = jax.random.split(key, 5)

    dtype = jnp.float32
    hidden_states = jax.random.normal(kx, (BATCH, SEQ, HIDDEN), dtype=dtype)

    # Deterministic synthetic weights, torch-style (out_features, in_features).
    torch_params = {
        "q_w": 0.05 * jax.random.normal(kq, (NUM_HEADS * HEAD_DIM, HIDDEN), dtype=dtype),
        "k_w": 0.05 * jax.random.normal(kk, (NUM_KV_HEADS * HEAD_DIM, HIDDEN), dtype=dtype),
        "v_w": 0.05 * jax.random.normal(kv, (NUM_KV_HEADS * HEAD_DIM, HIDDEN), dtype=dtype),
        "o_w": 0.05 * jax.random.normal(ko, (HIDDEN, NUM_HEADS * HEAD_DIM), dtype=dtype),
    }
    kernel_params = prepare_params(torch_params)   # one-time transpose + fused/rot QKV

    # Causal additive mask: (B, 1, S, S), 0 on/below diagonal, large negative above.
    causal = jnp.tril(jnp.ones((SEQ, SEQ), dtype=bool))
    attention_mask = jnp.where(causal, 0.0, jnp.finfo(dtype).min).astype(dtype)
    attention_mask = jnp.broadcast_to(attention_mask[None, None], (BATCH, 1, SEQ, SEQ))

    out = grinmoe_attention_forward(kernel_params, hidden_states, attention_mask)
    out = jax.block_until_ready(out)

    ref = reference_forward(torch_params, hidden_states, attention_mask)
    assert out.shape == (BATCH, SEQ, HIDDEN)
    assert jnp.allclose(out, ref, atol=1e-4, rtol=1e-4), (
        f"max abs diff {jnp.max(jnp.abs(out - ref))}"
    )

    print("KERNEL_OK")
</pallas_src>

<mosaic_0001>
module attributes {stable_mosaic.version = 11 : i64} {
  func.func @_fused_attention_kernel(%arg0: i32, %arg1: memref<16x64xf32, #tpu.memory_space<vmem>>, %arg2: memref<64x256xf32, #tpu.memory_space<vmem>>, %arg3: memref<64x64xf32, #tpu.memory_space<vmem>>, %arg4: memref<16x128xf32, #tpu.memory_space<vmem>>, %arg5: memref<16x128xf32, #tpu.memory_space<vmem>>, %arg6: memref<2x1x8x8xf32, #tpu.memory_space<vmem>>, %arg7: memref<16x64xf32, #tpu.memory_space<vmem>>) attributes {dimension_semantics = [#tpu.dimension_semantics<arbitrary>], iteration_bounds = array<i64: 1>, scalar_prefetch = 0 : i64, scratch_operands = 0 : i64, tpu.core_type = #tpu.core_type<tc>, window_params = [{pipeline_mode = #tpu.pipeline_mode<synchronous>, transform_indices = @transform_0, window_bounds = array<i64: 16, 64>}, {pipeline_mode = #tpu.pipeline_mode<synchronous>, transform_indices = @transform_1, window_bounds = array<i64: 64, 256>}, {pipeline_mode = #tpu.pipeline_mode<synchronous>, transform_indices = @transform_2, window_bounds = array<i64: 64, 64>}, {pipeline_mode = #tpu.pipeline_mode<synchronous>, transform_indices = @transform_3, window_bounds = array<i64: 16, 128>}, {pipeline_mode = #tpu.pipeline_mode<synchronous>, transform_indices = @transform_4, window_bounds = array<i64: 16, 128>}, {pipeline_mode = #tpu.pipeline_mode<synchronous>, transform_indices = @transform_5, window_bounds = array<i64: 2, 1, 8, 8>}, {pipeline_mode = #tpu.pipeline_mode<synchronous>, transform_indices = @transform_6, window_bounds = array<i64: 16, 64>}]} {
    %c0 = arith.constant 0 : index
    %c0_0 = arith.constant 0 : index
    %0 = vector.load %arg1[%c0, %c0_0] : memref<16x64xf32, #tpu.memory_space<vmem>>, vector<16x64xf32>
    %c0_1 = arith.constant 0 : index
    %c0_2 = arith.constant 0 : index
    %1 = vector.load %arg2[%c0_1, %c0_2] : memref<64x256xf32, #tpu.memory_space<vmem>>, vector<64x256xf32>
    %cst = arith.constant dense<0.000000e+00> : vector<16x256xf32>
    %2 = tpu.matmul %0, %1, %cst {dimension_numbers = #tpu.dot_dimension_numbers<[1], [0], [0], [1], [0, 0, 1, 1], [], []>} : vector<16x64xf32>, vector<64x256xf32>, vector<16x256xf32> -> vector<16x256xf32>
    %c0_3 = arith.constant 0 : index
    %c0_4 = arith.constant 0 : index
    %3 = vector.load %arg4[%c0_3, %c0_4] : memref<16x128xf32, #tpu.memory_space<vmem>>, vector<16x128xf32>
    %c0_5 = arith.constant 0 : index
    %c0_6 = arith.constant 0 : index
    %4 = vector.load %arg5[%c0_5, %c0_6] : memref<16x128xf32, #tpu.memory_space<vmem>>, vector<16x128xf32>
    %5 = vector.extract_strided_slice %2 {offsets = [0, 0], sizes = [16, 128], strides = [1, 1]} : vector<16x256xf32> to vector<16x128xf32>
    %6 = arith.mulf %5, %3 : vector<16x128xf32>
    %7 = vector.extract_strided_slice %2 {offsets = [0, 128], sizes = [16, 128], strides = [1, 1]} : vector<16x256xf32> to vector<16x128xf32>
    %8 = arith.mulf %7, %4 : vector<16x128xf32>
    %9 = arith.addf %6, %8 : vector<16x128xf32>
    %c0_7 = arith.constant 0 : index
    %c0_8 = arith.constant 0 : index
    %10 = vector.load %arg3[%c0_7, %c0_8] : memref<64x64xf32, #tpu.memory_space<vmem>>, vector<64x64xf32>
    %11 = vector.extract_strided_slice %9 {offsets = [0, 0], sizes = [8, 128], strides = [1, 1]} : vector<16x128xf32> to vector<8x128xf32>
    %c0_9 = arith.constant 0 : index
    %c0_10 = arith.constant 0 : index
    %c0_11 = arith.constant 0 : index
    %c0_12 = arith.constant 0 : index
    %12 = vector.load %arg6[%c0_9, %c0_10, %c0_11, %c0_12] : memref<2x1x8x8xf32, #tpu.memory_space<vmem>>, vector<1x1x8x8xf32>
    %13 = vector.shape_cast %12 : vector<1x1x8x8xf32> to vector<8x8xf32>
    %14 = vector.extract_strided_slice %11 {offsets = [0, 64], sizes = [8, 32], strides = [1, 1]} : vector<8x128xf32> to vector<8x32xf32>
    %15 = tpu.transpose %14, [1, 0] : vector<8x32xf32> -> vector<32x8xf32>
    %cst_13 = arith.constant 0.000000e+00 : f32
    %16 = vector.broadcast %cst_13 : f32 to vector<8x64xf32>
    %17 = vector.extract_strided_slice %15 {offsets = [0, 0], sizes = [16, 8], strides = [1, 1]} : vector<32x8xf32> to vector<16x8xf32>
    %18 = vector.extract_strided_slice %11 {offsets = [0, 96], sizes = [8, 16], strides = [1, 1]} : vector<8x128xf32> to vector<8x16xf32>
    %19 = vector.extract_strided_slice %11 {offsets = [0, 0], sizes = [8, 16], strides = [1, 1]} : vector<8x128xf32> to vector<8x16xf32>
    %cst_14 = arith.constant dense<0.000000e+00> : vector<8x8xf32>
    %20 = tpu.matmul %19, %17, %cst_14 {dimension_numbers = #tpu.dot_dimension_numbers<[1], [0], [0], [1], [0, 0, 1, 1], [], []>} : vector<8x16xf32>, vector<16x8xf32>, vector<8x8xf32> -> vector<8x8xf32>
    %cst_15 = arith.constant 2.500000e-01 : f32
    %21 = vector.broadcast %cst_15 : f32 to vector<8x8xf32>
    %22 = arith.mulf %20, %21 : vector<8x8xf32>
    %23 = arith.addf %22, %13 : vector<8x8xf32>
    %cst_16 = arith.constant dense<0xFF800000> : vector<8xf32>
    %24 = vector.multi_reduction <maximumf>, %23, %cst_16 [1] : vector<8x8xf32> to vector<8xf32>
    %25 = vector.shape_cast %24 : vector<8xf32> to vector<8x1xf32>
    %26 = vector.broadcast %25 : vector<8x1xf32> to vector<8x8xf32>
    %27 = arith.subf %23, %26 : vector<8x8xf32>
    %28 = math.exp %27 : vector<8x8xf32>
    %cst_17 = arith.constant dense<0.000000e+00> : vector<8xf32>
    %29 = vector.multi_reduction <add>, %28, %cst_17 [1] : vector<8x8xf32> to vector<8xf32>
    %30 = vector.shape_cast %29 : vector<8xf32> to vector<8x1xf32>
    %31 = tpu.reciprocal %30 : vector<8x1xf32> -> vector<8x1xf32>
    %32 = vector.broadcast %31 : vector<8x1xf32> to vector<8x8xf32>
    %33 = arith.mulf %28, %32 : vector<8x8xf32>
    %cst_18 = arith.constant dense<0.000000e+00> : vector<8x16xf32>
    %34 = tpu.matmul %33, %18, %cst_18 {dimension_numbers = #tpu.dot_dimension_numbers<[1], [0], [0], [1], [0, 0, 1, 1], [], []>} : vector<8x8xf32>, vector<8x16xf32>, vector<8x16xf32> -> vector<8x16xf32>
    %35 = vector.extract_strided_slice %10 {offsets = [0, 0], sizes = [16, 64], strides = [1, 1]} : vector<64x64xf32> to vector<16x64xf32>
    %cst_19 = arith.constant dense<0.000000e+00> : vector<8x64xf32>
    %36 = tpu.matmul %34, %35, %cst_19 {dimension_numbers = #tpu.dot_dimension_numbers<[1], [0], [0], [1], [0, 0, 1, 1], [], []>} : vector<8x16xf32>, vector<16x64xf32>, vector<8x64xf32> -> vector<8x64xf32>
    %37 = arith.addf %16, %36 : vector<8x64xf32>
    %38 = vector.extract_strided_slice %11 {offsets = [0, 16], sizes = [8, 16], strides = [1, 1]} : vector<8x128xf32> to vector<8x16xf32>
    %cst_20 = arith.constant dense<0.000000e+00> : vector<8x8xf32>
    %39 = tpu.matmul %38, %17, %cst_20 {dimension_numbers = #tpu.dot_dimension_numbers<[1], [0], [0], [1], [0, 0, 1, 1], [], []>} : vector<8x16xf32>, vector<16x8xf32>, vector<8x8xf32> -> vector<8x8xf32>
    %cst_21 = arith.constant 2.500000e-01 : f32
    %40 = vector.broadcast %cst_21 : f32 to vector<8x8xf32>
    %41 = arith.mulf %39, %40 : vector<8x8xf32>
    %42 = arith.addf %41, %13 : vector<8x8xf32>
    %cst_22 = arith.constant dense<0xFF800000> : vector<8xf32>
    %43 = vector.multi_reduction <maximumf>, %42, %cst_22 [1] : vector<8x8xf32> to vector<8xf32>
    %44 = vector.shape_cast %43 : vector<8xf32> to vector<8x1xf32>
    %45 = vector.broadcast %44 : vector<8x1xf32> to vector<8x8xf32>
    %46 = arith.subf %42, %45 : vector<8x8xf32>
    %47 = math.exp %46 : vector<8x8xf32>
    %cst_23 = arith.constant dense<0.000000e+00> : vector<8xf32>
    %48 = vector.multi_reduction <add>, %47, %cst_23 [1] : vector<8x8xf32> to vector<8xf32>
    %49 = vector.shape_cast %48 : vector<8xf32> to vector<8x1xf32>
    %50 = tpu.reciprocal %49 : vector<8x1xf32> -> vector<8x1xf32>
    %51 = vector.broadcast %50 : vector<8x1xf32> to vector<8x8xf32>
    %52 = arith.mulf %47, %51 : vector<8x8xf32>
    %cst_24 = arith.constant dense<0.000000e+00> : vector<8x16xf32>
    %53 = tpu.matmul %52, %18, %cst_24 {dimension_numbers = #tpu.dot_dimension_numbers<[1], [0], [0], [1], [0, 0, 1, 1], [], []>} : vector<8x8xf32>, vector<8x16xf32>, vector<8x16xf32> -> vector<8x16xf32>
    %54 = vector.extract_strided_slice %10 {offsets = [16, 0], sizes = [16, 64], strides = [1, 1]} : vector<64x64xf32> to vector<16x64xf32>
    %cst_25 = arith.constant dense<0.000000e+00> : vector<8x64xf32>
    %55 = tpu.matmul %53, %54, %cst_25 {dimension_numbers = #tpu.dot_dimension_numbers<[1], [0], [0], [1], [0, 0, 1, 1], [], []>} : vector<8x16xf32>, vector<16x64xf32>, vector<8x64xf32> -> vector<8x64xf32>
    %56 = arith.addf %37, %55 : vector<8x64xf32>
    %57 = vector.extract_strided_slice %15 {offsets = [16, 0], sizes = [16, 8], strides = [1, 1]} : vector<32x8xf32> to vector<16x8xf32>
    %58 = vector.extract_strided_slice %11 {offsets = [0, 112], sizes = [8, 16], strides = [1, 1]} : vector<8x128xf32> to vector<8x16xf32>
    %59 = vector.extract_strided_slice %11 {offsets = [0, 32], sizes = [8, 16], strides = [1, 1]} : vector<8x128xf32> to vector<8x16xf32>
    %cst_26 = arith.constant dense<0.000000e+00> : vector<8x8xf32>
    %60 = tpu.matmul %59, %57, %cst_26 {dimension_numbers = #tpu.dot_dimension_numbers<[1], [0], [0], [1], [0, 0, 1, 1], [], []>} : vector<8x16xf32>, vector<16x8xf32>, vector<8x8xf32> -> vector<8x8xf32>
    %cst_27 = arith.constant 2.500000e-01 : f32
    %61 = vector.broadcast %cst_27 : f32 to vector<8x8xf32>
    %62 = arith.mulf %60, %61 : vector<8x8xf32>
    %63 = arith.addf %62, %13 : vector<8x8xf32>
    %cst_28 = arith.constant dense<0xFF800000> : vector<8xf32>
    %64 = vector.multi_reduction <maximumf>, %63, %cst_28 [1] : vector<8x8xf32> to vector<8xf32>
    %65 = vector.shape_cast %64 : vector<8xf32> to vector<8x1xf32>
    %66 = vector.broadcast %65 : vector<8x1xf32> to vector<8x8xf32>
    %67 = arith.subf %63, %66 : vector<8x8xf32>
    %68 = math.exp %67 : vector<8x8xf32>
    %cst_29 = arith.constant dense<0.000000e+00> : vector<8xf32>
    %69 = vector.multi_reduction <add>, %68, %cst_29 [1] : vector<8x8xf32> to vector<8xf32>
    %70 = vector.shape_cast %69 : vector<8xf32> to vector<8x1xf32>
    %71 = tpu.reciprocal %70 : vector<8x1xf32> -> vector<8x1xf32>
    %72 = vector.broadcast %71 : vector<8x1xf32> to vector<8x8xf32>
    %73 = arith.mulf %68, %72 : vector<8x8xf32>
    %cst_30 = arith.constant dense<0.000000e+00> : vector<8x16xf32>
    %74 = tpu.matmul %73, %58, %cst_30 {dimension_numbers = #tpu.dot_dimension_numbers<[1], [0], [0], [1], [0, 0, 1, 1], [], []>} : vector<8x8xf32>, vector<8x16xf32>, vector<8x16xf32> -> vector<8x16xf32>
    %75 = vector.extract_strided_slice %10 {offsets = [32, 0], sizes = [16, 64], strides = [1, 1]} : vector<64x64xf32> to vector<16x64xf32>
    %cst_31 = arith.constant dense<0.000000e+00> : vector<8x64xf32>
    %76 = tpu.matmul %74, %75, %cst_31 {dimension_numbers = #tpu.dot_dimension_numbers<[1], [0], [0], [1], [0, 0, 1, 1], [], []>} : vector<8x16xf32>, vector<16x64xf32>, vector<8x64xf32> -> vector<8x64xf32>
    %77 = arith.addf %56, %76 : vector<8x64xf32>
    %78 = vector.extract_strided_slice %11 {offsets = [0, 48], sizes = [8, 16], strides = [1, 1]} : vector<8x128xf32> to vector<8x16xf32>
    %cst_32 = arith.constant dense<0.000000e+00> : vector<8x8xf32>
    %79 = tpu.matmul %78, %57, %cst_32 {dimension_numbers = #tpu.dot_dimension_numbers<[1], [0], [0], [1], [0, 0, 1, 1], [], []>} : vector<8x16xf32>, vector<16x8xf32>, vector<8x8xf32> -> vector<8x8xf32>
    %cst_33 = arith.constant 2.500000e-01 : f32
    %80 = vector.broadcast %cst_33 : f32 to vector<8x8xf32>
    %81 = arith.mulf %79, %80 : vector<8x8xf32>
    %82 = arith.addf %81, %13 : vector<8x8xf32>
    %cst_34 = arith.constant dense<0xFF800000> : vector<8xf32>
    %83 = vector.multi_reduction <maximumf>, %82, %cst_34 [1] : vector<8x8xf32> to vector<8xf32>
    %84 = vector.shape_cast %83 : vector<8xf32> to vector<8x1xf32>
    %85 = vector.broadcast %84 : vector<8x1xf32> to vector<8x8xf32>
    %86 = arith.subf %82, %85 : vector<8x8xf32>
    %87 = math.exp %86 : vector<8x8xf32>
    %cst_35 = arith.constant dense<0.000000e+00> : vector<8xf32>
    %88 = vector.multi_reduction <add>, %87, %cst_35 [1] : vector<8x8xf32> to vector<8xf32>
    %89 = vector.shape_cast %88 : vector<8xf32> to vector<8x1xf32>
    %90 = tpu.reciprocal %89 : vector<8x1xf32> -> vector<8x1xf32>
    %91 = vector.broadcast %90 : vector<8x1xf32> to vector<8x8xf32>
    %92 = arith.mulf %87, %91 : vector<8x8xf32>
    %cst_36 = arith.constant dense<0.000000e+00> : vector<8x16xf32>
    %93 = tpu.matmul %92, %58, %cst_36 {dimension_numbers = #tpu.dot_dimension_numbers<[1], [0], [0], [1], [0, 0, 1, 1], [], []>} : vector<8x8xf32>, vector<8x16xf32>, vector<8x16xf32> -> vector<8x16xf32>
    %94 = vector.extract_strided_slice %10 {offsets = [48, 0], sizes = [16, 64], strides = [1, 1]} : vector<64x64xf32> to vector<16x64xf32>
    %cst_37 = arith.constant dense<0.000000e+00> : vector<8x64xf32>
    %95 = tpu.matmul %93, %94, %cst_37 {dimension_numbers = #tpu.dot_dimension_numbers<[1], [0], [0], [1], [0, 0, 1, 1], [], []>} : vector<8x16xf32>, vector<16x64xf32>, vector<8x64xf32> -> vector<8x64xf32>
    %96 = arith.addf %77, %95 : vector<8x64xf32>
    %c0_38 = arith.constant 0 : index
    %c0_39 = arith.constant 0 : index
    %97 = vector.load %arg7[%c0_38, %c0_39] : memref<16x64xf32, #tpu.memory_space<vmem>>, vector<8x64xf32>
    tpu.vector_store %arg7[%c0_38, %c0_39], %96 {strides = array<i32>} : memref<16x64xf32, #tpu.memory_space<vmem>>, vector<8x64xf32>,
    %98 = vector.extract_strided_slice %9 {offsets = [8, 0], sizes = [8, 128], strides = [1, 1]} : vector<16x128xf32> to vector<8x128xf32>
    %c1 = arith.constant 1 : index
    %c0_40 = arith.constant 0 : index
    %c0_41 = arith.constant 0 : index
    %c0_42 = arith.constant 0 : index
    %99 = vector.load %arg6[%c1, %c0_40, %c0_41, %c0_42] : memref<2x1x8x8xf32, #tpu.memory_space<vmem>>, vector<1x1x8x8xf32>
    %100 = vector.shape_cast %99 : vector<1x1x8x8xf32> to vector<8x8xf32>
    %101 = vector.extract_strided_slice %98 {offsets = [0, 64], sizes = [8, 32], strides = [1, 1]} : vector<8x128xf32> to vector<8x32xf32>
    %102 = tpu.transpose %101, [1, 0] : vector<8x32xf32> -> vector<32x8xf32>
    %cst_43 = arith.constant 0.000000e+00 : f32
    %103 = vector.broadcast %cst_43 : f32 to vector<8x64xf32>
    %104 = vector.extract_strided_slice %102 {offsets = [0, 0], sizes = [16, 8], strides = [1, 1]} : vector<32x8xf32> to vector<16x8xf32>
    %105 = vector.extract_strided_slice %98 {offsets = [0, 96], sizes = [8, 16], strides = [1, 1]} : vector<8x128xf32> to vector<8x16xf32>
    %106 = vector.extract_strided_slice %98 {offsets = [0, 0], sizes = [8, 16], strides = [1, 1]} : vector<8x128xf32> to vector<8x16xf32>
    %cst_44 = arith.constant dense<0.000000e+00> : vector<8x8xf32>
    %107 = tpu.matmul %106, %104, %cst_44 {dimension_numbers = #tpu.dot_dimension_numbers<[1], [0], [0], [1], [0, 0, 1, 1], [], []>} : vector<8x16xf32>, vector<16x8xf32>, vector<8x8xf32> -> vector<8x8xf32>
    %cst_45 = arith.constant 2.500000e-01 : f32
    %108 = vector.broadcast %cst_45 : f32 to vector<8x8xf32>
    %109 = arith.mulf %107, %108 : vector<8x8xf32>
    %110 = arith.addf %109, %100 : vector<8x8xf32>
    %cst_46 = arith.constant dense<0xFF800000> : vector<8xf32>
    %111 = vector.multi_reduction <maximumf>, %110, %cst_46 [1] : vector<8x8xf32> to vector<8xf32>
    %112 = vector.shape_cast %111 : vector<8xf32> to vector<8x1xf32>
    %113 = vector.broadcast %112 : vector<8x1xf32> to vector<8x8xf32>
    %114 = arith.subf %110, %113 : vector<8x8xf32>
    %115 = math.exp %114 : vector<8x8xf32>
    %cst_47 = arith.constant dense<0.000000e+00> : vector<8xf32>
    %116 = vector.multi_reduction <add>, %115, %cst_47 [1] : vector<8x8xf32> to vector<8xf32>
    %117 = vector.shape_cast %116 : vector<8xf32> to vector<8x1xf32>
    %118 = tpu.reciprocal %117 : vector<8x1xf32> -> vector<8x1xf32>
    %119 = vector.broadcast %118 : vector<8x1xf32> to vector<8x8xf32>
    %120 = arith.mulf %115, %119 : vector<8x8xf32>
    %cst_48 = arith.constant dense<0.000000e+00> : vector<8x16xf32>
    %121 = tpu.matmul %120, %105, %cst_48 {dimension_numbers = #tpu.dot_dimension_numbers<[1], [0], [0], [1], [0, 0, 1, 1], [], []>} : vector<8x8xf32>, vector<8x16xf32>, vector<8x16xf32> -> vector<8x16xf32>
    %122 = vector.extract_strided_slice %10 {offsets = [0, 0], sizes = [16, 64], strides = [1, 1]} : vector<64x64xf32> to vector<16x64xf32>
    %cst_49 = arith.constant dense<0.000000e+00> : vector<8x64xf32>
    %123 = tpu.matmul %121, %122, %cst_49 {dimension_numbers = #tpu.dot_dimension_numbers<[1], [0], [0], [1], [0, 0, 1, 1], [], []>} : vector<8x16xf32>, vector<16x64xf32>, vector<8x64xf32> -> vector<8x64xf32>
    %124 = arith.addf %103, %123 : vector<8x64xf32>
    %125 = vector.extract_strided_slice %98 {offsets = [0, 16], sizes = [8, 16], strides = [1, 1]} : vector<8x128xf32> to vector<8x16xf32>
    %cst_50 = arith.constant dense<0.000000e+00> : vector<8x8xf32>
    %126 = tpu.matmul %125, %104, %cst_50 {dimension_numbers = #tpu.dot_dimension_numbers<[1], [0], [0], [1], [0, 0, 1, 1], [], []>} : vector<8x16xf32>, vector<16x8xf32>, vector<8x8xf32> -> vector<8x8xf32>
    %cst_51 = arith.constant 2.500000e-01 : f32
    %127 = vector.broadcast %cst_51 : f32 to vector<8x8xf32>
    %128 = arith.mulf %126, %127 : vector<8x8xf32>
    %129 = arith.addf %128, %100 : vector<8x8xf32>
    %cst_52 = arith.constant dense<0xFF800000> : vector<8xf32>
    %130 = vector.multi_reduction <maximumf>, %129, %cst_52 [1] : vector<8x8xf32> to vector<8xf32>
    %131 = vector.shape_cast %130 : vector<8xf32> to vector<8x1xf32>
    %132 = vector.broadcast %131 : vector<8x1xf32> to vector<8x8xf32>
    %133 = arith.subf %129, %132 : vector<8x8xf32>
    %134 = math.exp %133 : vector<8x8xf32>
    %cst_53 = arith.constant dense<0.000000e+00> : vector<8xf32>
    %135 = vector.multi_reduction <add>, %134, %cst_53 [1] : vector<8x8xf32> to vector<8xf32>
    %136 = vector.shape_cast %135 : vector<8xf32> to vector<8x1xf32>
    %137 = tpu.reciprocal %136 : vector<8x1xf32> -> vector<8x1xf32>
    %138 = vector.broadcast %137 : vector<8x1xf32> to vector<8x8xf32>
    %139 = arith.mulf %134, %138 : vector<8x8xf32>
    %cst_54 = arith.constant dense<0.000000e+00> : vector<8x16xf32>
    %140 = tpu.matmul %139, %105, %cst_54 {dimension_numbers = #tpu.dot_dimension_numbers<[1], [0], [0], [1], [0, 0, 1, 1], [], []>} : vector<8x8xf32>, vector<8x16xf32>, vector<8x16xf32> -> vector<8x16xf32>
    %141 = vector.extract_strided_slice %10 {offsets = [16, 0], sizes = [16, 64], strides = [1, 1]} : vector<64x64xf32> to vector<16x64xf32>
    %cst_55 = arith.constant dense<0.000000e+00> : vector<8x64xf32>
    %142 = tpu.matmul %140, %141, %cst_55 {dimension_numbers = #tpu.dot_dimension_numbers<[1], [0], [0], [1], [0, 0, 1, 1], [], []>} : vector<8x16xf32>, vector<16x64xf32>, vector<8x64xf32> -> vector<8x64xf32>
    %143 = arith.addf %124, %142 : vector<8x64xf32>
    %144 = vector.extract_strided_slice %102 {offsets = [16, 0], sizes = [16, 8], strides = [1, 1]} : vector<32x8xf32> to vector<16x8xf32>
    %145 = vector.extract_strided_slice %98 {offsets = [0, 112], sizes = [8, 16], strides = [1, 1]} : vector<8x128xf32> to vector<8x16xf32>
    %146 = vector.extract_strided_slice %98 {offsets = [0, 32], sizes = [8, 16], strides = [1, 1]} : vector<8x128xf32> to vector<8x16xf32>
    %cst_56 = arith.constant dense<0.000000e+00> : vector<8x8xf32>
    %147 = tpu.matmul %146, %144, %cst_56 {dimension_numbers = #tpu.dot_dimension_numbers<[1], [0], [0], [1], [0, 0, 1, 1], [], []>} : vector<8x16xf32>, vector<16x8xf32>, vector<8x8xf32> -> vector<8x8xf32>
    %cst_57 = arith.constant 2.500000e-01 : f32
    %148 = vector.broadcast %cst_57 : f32 to vector<8x8xf32>
    %149 = arith.mulf %147, %148 : vector<8x8xf32>
    %150 = arith.addf %149, %100 : vector<8x8xf32>
    %cst_58 = arith.constant dense<0xFF800000> : vector<8xf32>
    %151 = vector.multi_reduction <maximumf>, %150, %cst_58 [1] : vector<8x8xf32> to vector<8xf32>
    %152 = vector.shape_cast %151 : vector<8xf32> to vector<8x1xf32>
    %153 = vector.broadcast %152 : vector<8x1xf32> to vector<8x8xf32>
    %154 = arith.subf %150, %153 : vector<8x8xf32>
    %155 = math.exp %154 : vector<8x8xf32>
    %cst_59 = arith.constant dense<0.000000e+00> : vector<8xf32>
    %156 = vector.multi_reduction <add>, %155, %cst_59 [1] : vector<8x8xf32> to vector<8xf32>
    %157 = vector.shape_cast %156 : vector<8xf32> to vector<8x1xf32>
    %158 = tpu.reciprocal %157 : vector<8x1xf32> -> vector<8x1xf32>
    %159 = vector.broadcast %158 : vector<8x1xf32> to vector<8x8xf32>
    %160 = arith.mulf %155, %159 : vector<8x8xf32>
    %cst_60 = arith.constant dense<0.000000e+00> : vector<8x16xf32>
    %161 = tpu.matmul %160, %145, %cst_60 {dimension_numbers = #tpu.dot_dimension_numbers<[1], [0], [0], [1], [0, 0, 1, 1], [], []>} : vector<8x8xf32>, vector<8x16xf32>, vector<8x16xf32> -> vector<8x16xf32>
    %162 = vector.extract_strided_slice %10 {offsets = [32, 0], sizes = [16, 64], strides = [1, 1]} : vector<64x64xf32> to vector<16x64xf32>
    %cst_61 = arith.constant dense<0.000000e+00> : vector<8x64xf32>
    %163 = tpu.matmul %161, %162, %cst_61 {dimension_numbers = #tpu.dot_dimension_numbers<[1], [0], [0], [1], [0, 0, 1, 1], [], []>} : vector<8x16xf32>, vector<16x64xf32>, vector<8x64xf32> -> vector<8x64xf32>
    %164 = arith.addf %143, %163 : vector<8x64xf32>
    %165 = vector.extract_strided_slice %98 {offsets = [0, 48], sizes = [8, 16], strides = [1, 1]} : vector<8x128xf32> to vector<8x16xf32>
    %cst_62 = arith.constant dense<0.000000e+00> : vector<8x8xf32>
    %166 = tpu.matmul %165, %144, %cst_62 {dimension_numbers = #tpu.dot_dimension_numbers<[1], [0], [0], [1], [0, 0, 1, 1], [], []>} : vector<8x16xf32>, vector<16x8xf32>, vector<8x8xf32> -> vector<8x8xf32>
    %cst_63 = arith.constant 2.500000e-01 : f32
    %167 = vector.broadcast %cst_63 : f32 to vector<8x8xf32>
    %168 = arith.mulf %166, %167 : vector<8x8xf32>
    %169 = arith.addf %168, %100 : vector<8x8xf32>
    %cst_64 = arith.constant dense<0xFF800000> : vector<8xf32>
    %170 = vector.multi_reduction <maximumf>, %169, %cst_64 [1] : vector<8x8xf32> to vector<8xf32>
    %171 = vector.shape_cast %170 : vector<8xf32> to vector<8x1xf32>
    %172 = vector.broadcast %171 : vector<8x1xf32> to vector<8x8xf32>
    %173 = arith.subf %169, %172 : vector<8x8xf32>
    %174 = math.exp %173 : vector<8x8xf32>
    %cst_65 = arith.constant dense<0.000000e+00> : vector<8xf32>
    %175 = vector.multi_reduction <add>, %174, %cst_65 [1] : vector<8x8xf32> to vector<8xf32>
    %176 = vector.shape_cast %175 : vector<8xf32> to vector<8x1xf32>
    %177 = tpu.reciprocal %176 : vector<8x1xf32> -> vector<8x1xf32>
    %178 = vector.broadcast %177 : vector<8x1xf32> to vector<8x8xf32>
    %179 = arith.mulf %174, %178 : vector<8x8xf32>
    %cst_66 = arith.constant dense<0.000000e+00> : vector<8x16xf32>
    %180 = tpu.matmul %179, %145, %cst_66 {dimension_numbers = #tpu.dot_dimension_numbers<[1], [0], [0], [1], [0, 0, 1, 1], [], []>} : vector<8x8xf32>, vector<8x16xf32>, vector<8x16xf32> -> vector<8x16xf32>
    %181 = vector.extract_strided_slice %10 {offsets = [48, 0], sizes = [16, 64], strides = [1, 1]} : vector<64x64xf32> to vector<16x64xf32>
    %cst_67 = arith.constant dense<0.000000e+00> : vector<8x64xf32>
    %182 = tpu.matmul %180, %181, %cst_67 {dimension_numbers = #tpu.dot_dimension_numbers<[1], [0], [0], [1], [0, 0, 1, 1], [], []>} : vector<8x16xf32>, vector<16x64xf32>, vector<8x64xf32> -> vector<8x64xf32>
    %183 = arith.addf %164, %182 : vector<8x64xf32>
    %c8 = arith.constant 8 : index
    %c0_68 = arith.constant 0 : index
    %184 = vector.load %arg7[%c8, %c0_68] : memref<16x64xf32, #tpu.memory_space<vmem>>, vector<8x64xf32>
    tpu.vector_store %arg7[%c8, %c0_68], %183 {strides = array<i32>} : memref<16x64xf32, #tpu.memory_space<vmem>>, vector<8x64xf32>,
    return
  }
  func.func @transform_0(%arg0: i32) -> (i32, i32) {
    %c0_i32 = arith.constant 0 : i32
    %c0_i32_0 = arith.constant 0 : i32
    %c0_i32_1 = arith.constant 0 : i32
    return %c0_i32, %c0_i32_0 : i32, i32
  }
  func.func @transform_1(%arg0: i32) -> (i32, i32) {
    %c0_i32 = arith.constant 0 : i32
    %c0_i32_0 = arith.constant 0 : i32
    %c0_i32_1 = arith.constant 0 : i32
    return %c0_i32, %c0_i32_0 : i32, i32
  }
  func.func @transform_2(%arg0: i32) -> (i32, i32) {
    %c0_i32 = arith.constant 0 : i32
    %c0_i32_0 = arith.constant 0 : i32
    %c0_i32_1 = arith.constant 0 : i32
    return %c0_i32, %c0_i32_0 : i32, i32
  }
  func.func @transform_3(%arg0: i32) -> (i32, i32) {
    %c0_i32 = arith.constant 0 : i32
    %c0_i32_0 = arith.constant 0 : i32
    %c0_i32_1 = arith.constant 0 : i32
    return %c0_i32, %c0_i32_0 : i32, i32
  }
  func.func @transform_4(%arg0: i32) -> (i32, i32) {
    %c0_i32 = arith.constant 0 : i32
    %c0_i32_0 = arith.constant 0 : i32
    %c0_i32_1 = arith.constant 0 : i32
    return %c0_i32, %c0_i32_0 : i32, i32
  }
  func.func @transform_5(%arg0: i32) -> (i32, i32, i32, i32) {
    %c0_i32 = arith.constant 0 : i32
    %c0_i32_0 = arith.constant 0 : i32
    %c0_i32_1 = arith.constant 0 : i32
    %c0_i32_2 = arith.constant 0 : i32
    %c0_i32_3 = arith.constant 0 : i32
    return %c0_i32, %c0_i32_0, %c0_i32_1, %c0_i32_2 : i32, i32, i32, i32
  }
  func.func @transform_6(%arg0: i32) -> (i32, i32) {
    %c0_i32 = arith.constant 0 : i32
    %c0_i32_0 = arith.constant 0 : i32
    %c0_i32_1 = arith.constant 0 : i32
    return %c0_i32, %c0_i32_0 : i32, i32
  }
}

</mosaic_0001>

<bundles_post_ra>
// kernel: tile.34
= control target key start
LH: loop header
LB: loop body
LE: loop exit
PB: predicated region body
PF: predicated region fallthrough
CT: control target
= control target key end

     0   :  { %vm42_vm0 = vcmask 1047556   ;;  %vm44_vm1 = vcmask 130048   ;;  %s93_s22 = smov 16   ;;  %s94_s25 = smov 32   ;;  %vm54_vm2 = vcmask 523648   ;;  %vm64_vm3 = vcmask 392448   ;;  %s146_s0 = inlined_call_operand.vmem [shape: f32[8,4,16], index: 0, kind: input, shape index: {}]   ;;  %s147_s1 = inlined_call_operand.vmem [shape: f32[8,64], index: 1, kind: output, shape index: {}]  }
   0x1   :  { %v82_v0 = vld [vmem:[%s146_s0 + $0x1c] sm:$0xf]  ;;  %v83_v1 = vld [vmem:[%s146_s0 + $0x18] sm:$0xf]  ;;  %v84_v2 = vld [vmem:[%s146_s0 + $0x14] sm:$0xf] }
   0x2   :  { %8 = vst [vmem:[#allocation0 + $0x38] sm:$0xf] %v82_v0  ;;  %13 = vst [vmem:[#allocation0 + $0x30] sm:$0xf] %v83_v1  ;;  %v85_v3 = vld [vmem:[%s146_s0 + $0x10] sm:$0xf] }
   0x3   :  { %18 = vst [vmem:[#allocation0 + $0x28] sm:$0xf] %v84_v2  ;;  %v86_v4 = vld [vmem:[%s146_s0 + $0xc] sm:$0xf]  ;;  %v87_v5 = vld [vmem:[%s146_s0 + $0x8] sm:$0xf] }
   0x4   :  { %23 = vst [vmem:[#allocation0 + $0x20] sm:$0xf] %v85_v3  ;;  %28 = vst [vmem:[#allocation0 + $0x18] sm:$0xf] %v86_v4  ;;  %v88_v6 = vld [vmem:[%s146_s0 + $0x4] sm:$0xf] }
   0x5   :  { %33 = vst [vmem:[#allocation0 + $0x10] sm:$0xf] %v87_v5  ;;  %v38_v7 = vld [vmem:[%s146_s0] sm:$0xf]  ;;  %37 = vst [vmem:[#allocation0 + $0x8] sm:$0xf] %v88_v6 }
   0x6   :  { %39 = vst [vmem:[#allocation0] sm:$0xf] %v38_v7  ;;  %s92_s0 = smov 48   ;;  %vm74_vm4 = vcmask 261248  }
   0xb   :  { %v49_v8 = vld [vmem:[#allocation0 + $0x3] ss:$8 sm:$0xf0]   ;;  %v59_v9 = vld [vmem:[#allocation0 + $0x2] ss:$8 sm:$0xf0]  }
   0xc   :  { %v69_v14 = vld [vmem:[#allocation0 + $0x1] ss:$8 sm:$0xf0]   ;;  %v41_v17 = vld [vmem:[#allocation0] ss:$8 sm:$0xf0]  }
   0xd   :  { %v47_v10 = vld [vmem:[#allocation0 + $0x3] ss:$8 sm:$0xf]   ;;  %v57_v11 = vld [vmem:[#allocation0 + $0x2] ss:$8 sm:$0xf]  }
   0xe   :  { %v51_v12 = vsel %vm42_vm0, %v49_v8, %v47_v10  ;;  %v67_v13 = vld [vmem:[#allocation0 + $0x1] ss:$8 sm:$0xf]   ;;  %v40_v16 = vld [vmem:[#allocation0] ss:$8 sm:$0xf]   ;;  %v61_v18 = vsel %vm42_vm0, %v59_v9, %v57_v11 }
   0xf   :  { %52 = vrot.lane.b32.xlu0 %v51_v12, %s92_s0  ;;  %v71_v15 = vsel %vm42_vm0, %v69_v14, %v67_v13  ;;  %v43_v19 = vsel %vm42_vm0, %v41_v17, %v40_v16 }
  0x10   :  { %72 = vrot.lane.b32.xlu1 %v71_v15, %s93_s22  ;;  %45 = vst.msk [vmem:[%s147_s1] sm:$0xff] %vm44_vm1, %v43_v19  }
  0x13   :  { %62 = vrot.lane.b32.xlu0 %v61_v18, %s94_s25 }
  0x81   :  { %v53_v20 = vpop.permute.xlu0 %52  }
  0x82   :  { %55 = vst.msk [vmem:[%s147_s1] sm:$0xff] %vm54_vm2, %v53_v20   ;;  %v73_v21 = vpop.permute.xlu1 %72  }
  0x85   :  { %v63_v22 = vpop.permute.xlu0 %62  }
  0x86   :  { %65 = vst.msk [vmem:[%s147_s1] sm:$0xff] %vm64_vm3, %v63_v22  }
  0x87   :  { %75 = vst.msk [vmem:[%s147_s1] sm:$0xff] %vm74_vm4, %v73_v21  }

// kernel: tile.39
= control target key start
LH: loop header
LB: loop body
LE: loop exit
PB: predicated region body
PF: predicated region fallthrough
CT: control target
= control target key end

     0   :  { %vm42_vm0 = vcmask 1047556   ;;  %vm44_vm1 = vcmask 130048   ;;  %vm54_vm2 = vcmask 261248   ;;  %s111_s0 = inlined_call_operand.vmem [shape: f32[8,2,16], index: 0, kind: input, shape index: {}]   ;;  %s112_s1 = inlined_call_operand.vmem [shape: f32[8,32], index: 1, kind: output, shape index: {}]  }
   0x1   :  { %v62_v0 = vld [vmem:[%s111_s0 + $0xe] sm:$0x3]  ;;  %v63_v1 = vld [vmem:[%s111_s0 + $0xc] sm:$0x3]  ;;  %v64_v2 = vld [vmem:[%s111_s0 + $0xa] sm:$0x3] }
   0x2   :  { %8 = vst [vmem:[#allocation0 + $0x38] sm:$0x3] %v62_v0  ;;  %13 = vst [vmem:[#allocation0 + $0x30] sm:$0x3] %v63_v1  ;;  %v65_v3 = vld [vmem:[%s111_s0 + $0x8] sm:$0x3] }
   0x3   :  { %18 = vst [vmem:[#allocation0 + $0x28] sm:$0x3] %v64_v2  ;;  %v66_v4 = vld [vmem:[%s111_s0 + $0x6] sm:$0x3]  ;;  %v67_v5 = vld [vmem:[%s111_s0 + $0x4] sm:$0x3] }
   0x4   :  { %23 = vst [vmem:[#allocation0 + $0x20] sm:$0x3] %v65_v3  ;;  %28 = vst [vmem:[#allocation0 + $0x18] sm:$0x3] %v66_v4  ;;  %v68_v6 = vld [vmem:[%s111_s0 + $0x2] sm:$0x3] }
   0x5   :  { %33 = vst [vmem:[#allocation0 + $0x10] sm:$0x3] %v67_v5  ;;  %v38_v7 = vld [vmem:[%s111_s0] sm:$0x3]  ;;  %37 = vst [vmem:[#allocation0 + $0x8] sm:$0x3] %v68_v6 }
   0x6   :  { %39 = vst [vmem:[#allocation0] sm:$0x3] %v38_v7  ;;  %s70_s0 = smov 16  }
   0xb   :  { %v41_v8 = vld [vmem:[#allocation0] ss:$8 sm:$0xf0]   ;;  %v49_v9 = vld [vmem:[#allocation0 + $0x1] ss:$8 sm:$0xf0]  }
   0xd   :  { %v40_v10 = vld [vmem:[#allocation0] ss:$8 sm:$0xf]   ;;  %v47_v11 = vld [vmem:[#allocation0 + $0x1] ss:$8 sm:$0xf]  }
   0xe   :  { %v43_v12 = vsel %vm42_vm0, %v41_v8, %v40_v10  ;;  %v51_v13 = vsel %vm42_vm0, %v49_v9, %v47_v11 }
   0xf   :  { %52 = vrot.lane.b32.xlu0 %v51_v13, %s70_s0  ;;  %45 = vst.msk [vmem:[%s112_s1] sm:$0xff] %vm44_vm1, %v43_v12  }
  0x81   :  { %v53_v14 = vpop.permute.xlu0 %52  }
  0x82   :  { %55 = vst.msk [vmem:[%s112_s1] sm:$0xff] %vm54_vm2, %v53_v14  }

// kernel: grinmoe_attention_forward.1
= control target key start
LH: loop header
LB: loop body
LE: loop exit
PB: predicated region body
PF: predicated region fallthrough
CT: control target
= control target key end

     0   :  { %v2502_v7 = vmov 0.0   ;;  %s2847_s0 = inlined_call_operand.vmem [shape: f32[16,64], index: 0, kind: input, shape index: {}]   ;;  %s2848_s1 = inlined_call_operand.vmem [shape: f32[64,256], index: 1, kind: input, shape index: {}]   ;;  %s2849_s2 = inlined_call_operand.vmem [shape: f32[64,64], index: 2, kind: input, shape index: {}]   ;;  %s2850_s3 = inlined_call_operand.vmem [shape: f32[16,128], index: 3, kind: input, shape index: {}]   ;;  %s2851_s4 = inlined_call_operand.vmem [shape: f32[16,128], index: 4, kind: input, shape index: {}]   ;;  %s2852_s5 = inlined_call_operand.vmem [shape: f32[2,1,8,8], index: 5, kind: input, shape index: {}]   ;;  %s2853_s6 = inlined_call_operand.hbm [shape: f32[16,64], index: 6, kind: output, shape index: {}]  }
   0x1   :  { %v27_v0 = vld [vmem:[%s2848_s1 + $0x8] sm:$0xff]  ;;  %v29_v1 = vld [vmem:[%s2848_s1 + $0x18] sm:$0xff]  ;;  %v26_v2 = vld [vmem:[%s2848_s1] sm:$0xff]  ;;  %113 = vmatprep.mubr.f32.mxu0 %v2502_v7 }
   0x2   :  { %v2358_v3 = vpack.c.bf16 %v29_v1, %v27_v0  ;;  %v28_v4 = vld [vmem:[%s2848_s1 + $0x10] sm:$0xff]  ;;  %v31_v5 = vld [vmem:[%s2848_s1 + $0x28] sm:$0xff]  ;;  %v33_v6 = vld [vmem:[%s2848_s1 + $0x38] sm:$0xff] }
   0x3   :  { %v2360_v8 = vpack.c.bf16 %v28_v4, %v26_v2  ;;  %v2362_v9 = vpack.c.bf16 %v33_v6, %v31_v5  ;;  %v30_v10 = vld [vmem:[%s2848_s1 + $0x20] sm:$0xff]  ;;  %v32_v11 = vld [vmem:[%s2848_s1 + $0x30] sm:$0xff]  ;;  %v35_v12 = vld [vmem:[%s2848_s1 + $0x48] sm:$0xff] }
   0x4   :  { %2359 = vmatprep.subr.bf16.mxu0 %v2358_v3  ;;  %v37_v13 = vld [vmem:[%s2848_s1 + $0x58] sm:$0xff]  ;;  %v2364_v14 = vpack.c.bf16 %v32_v11, %v30_v10  ;;  %v34_v16 = vld [vmem:[%s2848_s1 + $0x40] sm:$0xff]  ;;  %v36_v17 = vld [vmem:[%s2848_s1 + $0x50] sm:$0xff] }
   0x5   :  { %2361 = vmatpush1.bf16.msra.mxu0 %v2360_v8  ;;  %v2366_v15 = vpack.c.bf16 %v37_v13, %v35_v12 }
   0x6   :  { %2363 = vmatprep.subr.bf16.mxu0 %v2362_v9 }
   0x7   :  { %11 = vsyncpa [#allocation3], 0  ;;  %v39_v18 = vld [vmem:[%s2848_s1 + $0x68] sm:$0xff]  ;;  %v41_v19 = vld [vmem:[%s2848_s1 + $0x78] sm:$0xff]  ;;  %v2368_v20 = vpack.c.bf16 %v36_v17, %v34_v16  ;;  %vm42_vm0 = vcmask 523264   ;;  %s2504_s11 = smov 64  }
   0x8   :  { %v2370_v21 = vpack.c.bf16 %v41_v19, %v39_v18  ;;  %v38_v22 = vld [vmem:[%s2848_s1 + $0x60] sm:$0xff]  ;;  %v40_v23 = vld [vmem:[%s2848_s1 + $0x70] sm:$0xff]  ;;  %s2503_s1 = smov 96   ;;  %v2505_v34 = vmov 0.0|0.0   ;;  %vm2506_vm1 = vmmov 0   ;;  %v25_v35 = vld [vmem:[%s2847_s0 + $0x8] sm:$0xff] }
   0x9   :  { %2365 = vmatpush1.bf16.msra.mxu0 %v2364_v14  ;;  %v2372_v24 = vpack.c.bf16 %v40_v23, %v38_v22  ;;  %v24_v25 = vld [vmem:[%s2847_s0] sm:$0xff]  ;;  %2374 = vmatprep.subr.bf16.mxu1 %v2505_v34  ;;  %vm181_vm2 = vcmask 130048   ;;  %v127_v44 = vld [vmem:[%s2850_s3 + $0x8] sm:$0xff]  ;;  %vm256_vm3 = vcmask 64512   ;;  %s2509_s19 = smov 80   ;;  %s2510_s20 = smov 16  }
   0xa   :  { %2367 = vmatprep.subr.bf16.mxu0 %v2366_v15  ;;  %v126_v26 = vld [vmem:[%s2850_s3] sm:$0xff]  ;;  %2210 = vmatprep.mubr.msk.f32.mxu1 %vm2506_vm1, %v2502_v7  ;;  %v129_v45 = vld [vmem:[%s2851_s4 + $0x8] sm:$0xff]  ;;  %s2507_s3 = smov 32  }
   0xb   :  { %v128_v27 = vld [vmem:[%s2851_s4] sm:$0xff]  ;;  %s2508_s4 = smov 112  }
   0xc   :  { %v2651_v51 = vld [vmem:[%s2852_s5] sm:$0xff] }
   0xd   :  { %2369 = vmatpush1.bf16.msra.mxu0 %v2368_v20 }
   0xe   :  { %2371 = vmatprep.subr.bf16.mxu0 %v2370_v21 }
  0x11   :  { %2373 = vmatpush1.bf16.msra.mxu0 %v2372_v24 }
  0x12   :  { %2386 = vmatprep.subr.bf16.mxu0 %v2505_v34 }
  0x14   :  { %2115 = vmatmul.mubr.msk.f32.vlgmr.msra.gmra.mrb[0].mxu0 %vm42_vm0, %v24_v25 }
  0x15   :  { %119 = vmatprep.mubr.f32.mxu0 %v2502_v7 }
  0x18   :  { %2116 = vmatmul.mubr.msk.f32.gmra.mrb[2].mxu0 %vm42_vm0, %v25_v35 }
  0x19   :  { %2248 = vmatprep.mubr.msk.f32.mxu0 %vm2506_vm1, %v2502_v7 }
  0xe7   :  { %v115_v28 = vpop.f32.mrb[0].mxu0 }
  0xe8   :  { %v130_v29 = vmul.f32 %v126_v26, %v115_v28  ;;  %v117_v30 = vpop.f32.mrb[1].mxu0 }
  0xe9   :  { %v132_v31 = vmul.f32 %v128_v27, %v117_v30 }
  0xeb   :  { %v2609_v32 = vadd.f32 %v132_v31, %v130_v29  ;;  %v121_v43 = vpop.f32.mrb[2].mxu0 }
  0xec   :  { %v131_v46 = vmul.f32 %v127_v44, %v121_v43  ;;  %v123_v47 = vpop.f32.mrb[3].mxu0 }
  0xed   :  { %650 = vrot.lane.b32.xlu1 %v2609_v32, %s2503_s1  ;;  %146 = vrot.lane.b32.xlu0 %v2609_v32, %s2504_s11  ;;  %v133_v48 = vmul.f32 %v129_v45, %v123_v47  ;;  %v138_v47 = vld [vmem:[%s2849_s2 + $0x10] sm:$0xff] }
  0xef   :  { %v2646_v49 = vadd.f32 %v133_v48, %v131_v46  ;;  %v139_v48 = vld [vmem:[%s2849_s2 + $0x18] sm:$0xff] }
 0x15f   :  { %v147_v33 = vpop.permute.xlu0 %146  ;;  %v651_v42 = vpop.permute.xlu1 %650 }
 0x160   :  { %149 = vxpose.xlu0.b32.start.end [1/1] (short) (narrow) %v147_v33, 32 }
 0x1e0   :  { %v165_v36 = vpop.trf.xlu0 }
 0x1e4   :  { %v166_v37 = vpop.trf.xlu0 }
 0x1e5   :  { %v2625_v38 = vpack.c.bf16 %v166_v37, %v165_v36 }
 0x1e7   :  { %2376 = vmatpush3.bf16.msra.mxu1 %v2625_v38 }
 0x1e8   :  { %v167_v39 = vpop.trf.xlu0  ;;  %2213 = vmatprep.subr.mxu1 %v2502_v7 }
 0x1ea   :  { %2211 = vmatmul.mubr.msk.f32.vlgmr.msra.gmra.mrb[0].mxu1 %vm181_vm2, %v2609_v32 }
 0x1eb   :  { %2215 = vmatprep.mubr.msk.f32.mxu1 %vm2506_vm1, %v2502_v7 }
 0x1ec   :  { %v168_v40 = vpop.trf.xlu0 }
 0x1ed   :  { %v2633_v41 = vpack.c.bf16 %v168_v40, %v167_v39 }
 0x1ef   :  { %2388 = vmatpush3.bf16.msra.mxu0 %v2633_v41 }
 0x1f0   :  { %2251 = vmatprep.subr.mxu0 %v2502_v7 }
 0x1f2   :  { %2249 = vmatmul.mubr.msk.f32.vlgmr.msra.gmra.mrb[4].mxu0 %vm181_vm2, %v651_v42 }
 0x1f3   :  { %2253 = vmatprep.mubr.msk.f32.mxu0 %vm2506_vm1, %v2502_v7 }
 0x2bd   :  { %v250_v50 = vpop.f32.mrb[0].mxu1 }
 0x2be   :  { %v254_v52 = vmul.f32 0.25, %v250_v50  ;;  %v2212_v53 = vpop.f32.mrb[1].mxu1  ;;  %v2381_v50 = vpack.c.bf16 %v139_v48, %v138_v47 }
 0x2c0   :  { %v255_v54 = vadd.f32 %v254_v52, %v2651_v51 }
 0x2c2   :  { %v257_v55 = vsel %vm256_vm3, %v255_v54, -inf }
 0x2c3   :  { %258 = vmax.xlane.f32.xlu1 %v257_v55 }
 0x2c5   :  { %v720_v56 = vpop.f32.mrb[4].mxu0 }
 0x2c6   :  { %v2250_v57 = vpop.f32.mrb[5].mxu0  ;;  %v724_v58 = vmul.f32 0.25, %v720_v56  ;;  %v136_v56 = vld [vmem:[%s2849_s2] sm:$0xff] }
 0x2c7   :  { %v137_v57 = vld [vmem:[%s2849_s2 + $0x8] sm:$0xff] }
 0x2c8   :  { %v725_v59 = vadd.f32 %v724_v58, %v2651_v51  ;;  %v2724_v58 = vpack.c.bf16 %v137_v57, %v136_v56 }
 0x2ca   :  { %v726_v60 = vsel %vm256_vm3, %v725_v59, -inf }
 0x2d4   :  { %268 = vrot.lane.b32.xlu1 %v2609_v32, %s2507_s3 }
 0x2d8   :  { %344 = vrot.lane.b32.xlu1 %v2609_v32, %s2508_s4 }
 0x2fc   :  { %727 = vmax.xlane.f32.xlu1 %v726_v60 }
 0x30d   :  { %887 = vrot.lane.b32.xlu1 %v2609_v32, %s2509_s19 }
 0x350   :  { %v259_v61 = vpop.xlane.xlu1 %258 }
 0x351   :  { %v260_v62 = vsub.f32 %v255_v54, %v259_v61  ;;  %v140_v61 = vld [vmem:[%s2849_s2 + $0x20] sm:$0xff] }
 0x353   :  { %v261_v63 = vmul.f32 1.442695, %v260_v62  ;;  %v141_v62 = vld [vmem:[%s2849_s2 + $0x28] sm:$0xff] }
 0x354   :  { %v269_v0 = vpop.permute.xlu1 %268 }
 0x355   :  { %2446 = vpow2.f32 %v261_v63  ;;  %2214 = vmatpush3.msra.mxu1 %v269_v0  ;;  %v2737_v63 = vpack.c.bf16 %v141_v62, %v140_v61 }
 0x356   :  { %2377 = vmatprep.subr.bf16.mxu1 %v2505_v34 }
 0x358   :  { %v345_v3 = vpop.permute.xlu1 %344 }
 0x35f   :  { %v2447_v1 = vpop.eup %2446 }
 0x360   :  { %v263_v2 = vsel %vm256_vm3, %v2447_v1, 0.0 }
 0x361   :  { %264 = vadd.xlane.f32.xlu0 %v263_v2  ;;  %v142_v2 = vld [vmem:[%s2849_s2 + $0x30] sm:$0xff] }
 0x389   :  { %v728_v4 = vpop.xlane.xlu1 %727 }
 0x38a   :  { %v729_v5 = vsub.f32 %v725_v59, %v728_v4 }
 0x38c   :  { %v730_v6 = vmul.f32 1.442695, %v729_v5 }
 0x38d   :  { %v888_v17 = vpop.permute.xlu1 %887 }
 0x38e   :  { %2448 = vpow2.f32 %v730_v6  ;;  %v2767_v6 = vld [vmem:[%s2852_s5 + $0x8] sm:$0xff] }
 0x398   :  { %v2449_v8 = vpop.eup %2448 }
 0x399   :  { %v732_v9 = vsel %vm256_vm3, %v2449_v8, 0.0 }
 0x39a   :  { %733 = vadd.xlane.f32.xlu0 %v732_v9 }
 0x3b0   :  { %737 = vrot.lane.b32.xlu0 %v2609_v32, %s2510_s20 }
 0x3ee   :  { %v265_v10 = vpop.xlane.xlu0 %264 }
 0x3ef   :  { %2450 = vrcp.f32 %v265_v10 }
 0x3f9   :  { %v2451_v11 = vpop.eup %2450 }
 0x3fa   :  { %v267_v12 = vmul.f32 %v2451_v11, %v2447_v1 }
 0x3fc   :  { %2216 = vmatmul.mubr.msk.f32.vlgmr.msra.gmra.mrb[2].mxu1 %vm256_vm3, %v267_v12 }
 0x3fd   :  { %2379 = vmatpush3.bf16.msra.mxu1 %v2625_v38  ;;  %2222 = vmatprep.mubr.msk.f32.mxu1 %vm2506_vm1, %v2502_v7 }
 0x3fe   :  { %2225 = vmatprep.subr.mxu1 %v2502_v7 }
 0x400   :  { %2223 = vmatmul.mubr.msk.f32.vlgmr.msra.gmra.mrb[4].mxu1 %vm181_vm2, %v345_v3  ;;  %v143_v3 = vld [vmem:[%s2849_s2 + $0x38] sm:$0xff]  ;;  %s2511_s2 = smov [#allocation2]  }
 0x401   :  { %2226 = vmatpush3.msra.mxu1 %v269_v0  ;;  %2227 = vmatprep.mubr.msk.f32.mxu1 %vm2506_vm1, %v2502_v7  ;;  %v2760_v4 = vpack.c.bf16 %v143_v3, %v142_v2  ;;  %s2104_s5 = sshll.u32 %s2511_s2, 4  ;;  %s2105_s5 = int_to_ptr.vmem [resolvable:$true] %s2104_s5 }
 0x402   :  { %2380 = vmatprep.subr.bf16.mxu1 %v2505_v34  ;;  %p2483_p1 = scmp.lt.s32.totalorder %s2105_s5, %s2105_s5 }
 0x427   :  { %v734_v13 = vpop.xlane.xlu0 %733 }
 0x428   :  { %2452 = vrcp.f32 %v734_v13 }
 0x42b   :  { %v2677_v14 = vpop.permute.xlu0 %737 }
 0x42c   :  { %2252 = vmatpush3.msra.mxu0 %v2677_v14 }
 0x42d   :  { %2392 = vmatprep.subr.bf16.mxu0 %v2505_v34 }
 0x432   :  { %v2453_v15 = vpop.eup %2452 }
 0x433   :  { %v736_v16 = vmul.f32 %v2453_v15, %v2449_v8 }
 0x435   :  { %2254 = vmatmul.mubr.msk.f32.vlgmr.msra.gmra.mrb[6].mxu0 %vm256_vm3, %v736_v16 }
 0x436   :  { %2394 = vmatpush3.bf16.msra.mxu0 %v2633_v41  ;;  %2267 = vmatprep.mubr.msk.f32.mxu0 %vm2506_vm1, %v2502_v7 }
 0x437   :  { %2398 = vmatprep.subr.bf16.mxu0 %v2505_v34 }
 0x439   :  { %2268 = vmatmul.mubr.msk.f32.vlgmr.msra.gmra.mrb[8].mxu0 %vm181_vm2, %v888_v17 }
 0x43a   :  { %2286 = vmatprep.mubr.msk.f32.mxu0 %vm2506_vm1, %v2502_v7 }
 0x4cf   :  { %v2689_v18 = vpop.f32.mrb[2].mxu1 }
 0x4d0   :  { %v2217_v19 = vpop.f32.mrb[3].mxu1 }
 0x4d3   :  { %v414_v20 = vpop.f32.mrb[4].mxu1 }
 0x4d4   :  { %v418_v21 = vmul.f32 0.25, %v414_v20  ;;  %v2224_v22 = vpop.f32.mrb[5].mxu1 }
 0x4d6   :  { %v419_v23 = vadd.f32 %v418_v21, %v2651_v51 }
 0x4d8   :  { %v420_v24 = vsel %vm256_vm3, %v419_v23, -inf }
 0x4d9   :  { %421 = vmax.xlane.f32.xlu1 %v420_v24 }
 0x508   :  { %v2693_v25 = vpop.f32.mrb[6].mxu0 }
 0x509   :  { %v2255_v26 = vpop.f32.mrb[7].mxu0 }
 0x50c   :  { %v957_v27 = vpop.f32.mrb[8].mxu0 }
 0x50d   :  { %v2269_v28 = vpop.f32.mrb[9].mxu0  ;;  %v961_v32 = vmul.f32 0.25, %v957_v27 }
 0x50f   :  { %v962_v36 = vadd.f32 %v961_v32, %v2651_v51 }
 0x511   :  { %v963_v37 = vsel %vm256_vm3, %v962_v36, -inf }
 0x566   :  { %v422_v29 = vpop.xlane.xlu1 %421 }
 0x567   :  { %v423_v30 = vsub.f32 %v419_v23, %v422_v29 }
 0x569   :  { %v424_v31 = vmul.f32 1.442695, %v423_v30 }
 0x56b   :  { %2454 = vpow2.f32 %v424_v31 }
 0x575   :  { %v2455_v33 = vpop.eup %2454 }
 0x576   :  { %v426_v35 = vsel %vm256_vm3, %v2455_v33, 0.0 }
 0x577   :  { %427 = vadd.xlane.f32.xlu0 %v426_v35 }
 0x57b   :  { %964 = vmax.xlane.f32.xlu0 %v963_v37 }
 0x591   :  { %1125 = vrot.lane.b32.xlu0 %v2646_v49, %s2504_s11 }
 0x604   :  { %v428_v38 = vpop.xlane.xlu0 %427 }
 0x605   :  { %2456 = vrcp.f32 %v428_v38 }
 0x608   :  { %v965_v39 = vpop.xlane.xlu0 %964 }
 0x609   :  { %v966_v40 = vsub.f32 %v962_v36, %v965_v39 }
 0x60b   :  { %v967_v41 = vmul.f32 1.442695, %v966_v40 }
 0x60c   :  { %v1126_v46 = vpop.permute.xlu0 %1125 }
 0x60d   :  { %2458 = vpow2.f32 %v967_v41 }
 0x60f   :  { %v2457_v42 = vpop.eup %2456 }
 0x610   :  { %v430_v43 = vmul.f32 %v2457_v42, %v2455_v33 }
 0x612   :  { %2228 = vmatmul.mubr.msk.f32.vlgmr.msra.gmra.mrb[6].mxu1 %vm256_vm3, %v430_v43 }
 0x613   :  { %2234 = vmatprep.mubr.msk.f32.mxu1 %vm2506_vm1, %v2502_v7  ;;  %2382 = vmatpush3.bf16.msra.mxu1 %v2381_v50 }
 0x614   :  { %2383 = vmatprep.subr.bf16.mxu1 %v2505_v34 }
 0x617   :  { %v2459_v44 = vpop.eup %2458 }
 0x618   :  { %v969_v45 = vsel %vm256_vm3, %v2459_v44, 0.0 }
 0x619   :  { %970 = vadd.xlane.f32.xlu1 %v969_v45 }
 0x62a   :  { %1321 = vrot.lane.b32.xlu1 %v2646_v49, %s2508_s4 }
 0x653   :  { %1128 = vxpose.xlu1.b32.start.end [1/1] (short) (narrow) %v1126_v46, 32 }
 0x6a6   :  { %v971_v51 = vpop.xlane.xlu1 %970 }
 0x6a7   :  { %2460 = vrcp.f32 %v971_v51 }
 0x6aa   :  { %v1322_v52 = vpop.permute.xlu1 %1321 }
 0x6b1   :  { %v2461_v0 = vpop.eup %2460 }
 0x6b2   :  { %v973_v1 = vmul.f32 %v2461_v0, %v2459_v44 }
 0x6d3   :  { %v1144_v53 = vpop.trf.xlu1 }
 0x6d7   :  { %v1145_v54 = vpop.trf.xlu1 }
 0x6d8   :  { %v2399_v55 = vpack.c.bf16 %v1145_v54, %v1144_v53 }
 0x6da   :  { %2400 = vmatpush3.bf16.msra.mxu0 %v2399_v55 }
 0x6db   :  { %2289 = vmatprep.subr.mxu0 %v2502_v7  ;;  %v1146_v36 = vpop.trf.xlu1 }
 0x6dd   :  { %2287 = vmatmul.mubr.msk.f32.vlgmr.msra.gmra.mrb[10].mxu0 %vm181_vm2, %v2646_v49 }
 0x6de   :  { %2291 = vmatprep.mubr.msk.f32.mxu0 %vm2506_vm1, %v2502_v7 }
 0x6df   :  { %v1147_v37 = vpop.trf.xlu1 }
 0x6e0   :  { %v2411_v41 = vpack.c.bf16 %v1147_v37, %v1146_v36 }
 0x6e5   :  { %v500_v59 = vpop.f32.mrb[6].mxu1 }
 0x6e6   :  { %v2229_v60 = vpop.f32.mrb[7].mxu1  ;;  %2235 = vmatmul.mubr.msk.f32.vlgmr.msra.gmra.mrb[8].mxu1 %vm181_vm2, %v500_v59 }
 0x6e7   :  { %2385 = vmatpush3.bf16.msra.mxu1 %v2724_v58  ;;  %2241 = vmatprep.mubr.msk.f32.mxu1 %vm2506_vm1, %v2502_v7 }
 0x6e8   :  { %2389 = vmatprep.subr.bf16.mxu1 %v2505_v34 }
 0x6ee   :  { %2242 = vmatmul.mubr.msk.f32.vlgmr.msra.gmra.mrb[8].mxu1 %vm181_vm2, %v2689_v18 }
 0x6ef   :  { %2391 = vmatpush3.bf16.msra.mxu1 %v2737_v63  ;;  %2260 = vmatprep.mubr.msk.f32.mxu1 %vm2506_vm1, %v2502_v7 }
 0x6f0   :  { %2270 = vmatprep.subr.mxu1 %v2502_v7 }
 0x6f6   :  { %2261 = vmatmul.mubr.msk.f32.vlgmr.msra.gmra.mrb[8].mxu1 %vm181_vm2, %v2693_v25 }
 0x6f7   :  { %2271 = vmatpush3.msra.mxu1 %v2677_v14  ;;  %2272 = vmatprep.mubr.msk.f32.mxu1 %vm2506_vm1, %v2502_v7 }
 0x6f8   :  { %2395 = vmatprep.subr.bf16.mxu1 %v2505_v34 }
 0x6fa   :  { %2273 = vmatmul.mubr.msk.f32.vlgmr.msra.gmra.mrb[10].mxu1 %vm256_vm3, %v973_v1 }
 0x6fb   :  { %2279 = vmatprep.mubr.msk.f32.mxu1 %vm2506_vm1, %v2502_v7  ;;  %2397 = vmatpush3.bf16.msra.mxu1 %v2760_v4 }
 0x6fc   :  { %2401 = vmatprep.subr.bf16.mxu1 %v2505_v34 }
 0x7b0   :  { %v1228_v5 = vpop.f32.mrb[10].mxu0 }
 0x7b1   :  { %v1232_v8 = vmul.f32 0.25, %v1228_v5  ;;  %v2288_v9 = vpop.f32.mrb[11].mxu0 }
 0x7b3   :  { %v1233_v10 = vadd.f32 %v2767_v6, %v1232_v8 }
 0x7b5   :  { %v1234_v11 = vsel %vm256_vm3, %v1233_v10, -inf }
 0x7b6   :  { %1235 = vmax.xlane.f32.xlu0 %v1234_v11 }
 0x7cd   :  { %v1043_v12 = vpop.f32.mrb[10].mxu1 }
 0x7ce   :  { %v2274_v13 = vpop.f32.mrb[11].mxu1  ;;  %2280 = vmatmul.mubr.msk.f32.vlgmr.msra.gmra.mrb[8].mxu1 %vm181_vm2, %v1043_v12 }
 0x7cf   :  { %2403 = vmatpush3.bf16.msra.mxu1 %v2399_v55  ;;  %2298 = vmatprep.mubr.msk.f32.mxu1 %vm2506_vm1, %v2502_v7 }
 0x7d0   :  { %2404 = vmatprep.subr.bf16.mxu1 %v2505_v34 }
 0x7d2   :  { %2299 = vmatmul.mubr.msk.f32.vlgmr.msra.gmra.mrb[12].mxu1 %vm181_vm2, %v1322_v52 }
 0x7d3   :  { %2406 = vmatpush3.bf16.msra.mxu1 %v2381_v50  ;;  %2310 = vmatprep.mubr.msk.f32.mxu1 %vm2506_vm1, %v2502_v7 }
 0x7d4   :  { %2407 = vmatprep.subr.bf16.mxu1 %v2505_v34 }
 0x843   :  { %v1236_v14 = vpop.xlane.xlu0 %1235 }
 0x844   :  { %v1237_v15 = vsub.f32 %v1233_v10, %v1236_v14 }
 0x846   :  { %v1238_v16 = vmul.f32 1.442695, %v1237_v15 }
 0x848   :  { %2462 = vpow2.f32 %v1238_v16 }
 0x852   :  { %v2463_v24 = vpop.eup %2462 }
 0x853   :  { %v1240_v25 = vsel %vm256_vm3, %v2463_v24, 0.0 }
 0x8a1   :  { %v1116_v17 = vpop.f32.mrb[8].mxu1 }
 0x8a2   :  { %1121 = vst.msk [vmem:[#allocation2] sm:$0xff] %vm42_vm0, %v1116_v17  ;;  %v2281_v18 = vpop.f32.mrb[9].mxu1 }
 0x8a5   :  { %v1391_v19 = vpop.f32.mrb[12].mxu1 }
 0x8a6   :  { %v1395_v20 = vmul.f32 0.25, %v1391_v19  ;;  %v2300_v21 = vpop.f32.mrb[13].mxu1 }
 0x8a8   :  { %v1396_v22 = vadd.f32 %v2767_v6, %v1395_v20 }
 0x8aa   :  { %v1397_v23 = vsel %vm256_vm3, %v1396_v22, -inf }
 0x8ab   :  { %1398 = vmax.xlane.f32.xlu0 %v1397_v23 }
 0x8af   :  { %1241 = vadd.xlane.f32.xlu0 %v1240_v25 }
 0x8c5   :  { %1245 = vrot.lane.b32.xlu0 %v2646_v49, %s2507_s3 }
 0x8c9   :  { %1627 = vrot.lane.b32.xlu0 %v2646_v49, %s2503_s1  ;;  %s2478_s1 = scalar_lea.vmem %s2105_s5, 256 }
 0x8ca   :  { %p2479_p0 = scmp.ne.s32.totalorder %s2105_s5, %s2478_s1  ;;  %p2484_p2 = scmp.lt.s32.totalorder %s2478_s1, %s2478_s1 }
 0x8cc   :  { %p2485_p3 = por %p2484_p2, %p2483_p1 }
 0x8ce   :  { %p2486_p4 = pnand %p2485_p3, %p2479_p0 }
 0x938   :  { %v1399_v26 = vpop.xlane.xlu0 %1398 }
 0x939   :  { %v1400_v27 = vsub.f32 %v1396_v22, %v1399_v26 }
 0x93b   :  { %v1401_v28 = vmul.f32 1.442695, %v1400_v27 }
 0x93c   :  { %v1242_v29 = vpop.xlane.xlu0 %1241 }
 0x93d   :  { %2464 = vpow2.f32 %v1401_v28 }
 0x93e   :  { %2466 = vrcp.f32 %v1242_v29 }
 0x940   :  { %v1246_v30 = vpop.permute.xlu0 %1245 }
 0x941   :  { %2290 = vmatpush3.msra.mxu0 %v1246_v30 }
 0x942   :  { %2301 = vmatprep.subr.mxu0 %v2502_v7 }
 0x944   :  { %v1628_v42 = vpop.permute.xlu0 %1627 }
 0x947   :  { %v2465_v31 = vpop.eup %2464 }
 0x948   :  { %v2467_v32 = vpop.eup %2466  ;;  %v1403_v33 = vsel %vm256_vm3, %v2465_v31, 0.0 }
 0x949   :  { %v1244_v35 = vmul.f32 %v2467_v32, %v2463_v24  ;;  %1404 = vadd.xlane.f32.xlu1 %v1403_v33 }
 0x94b   :  { %2292 = vmatmul.mubr.msk.f32.vlgmr.msra.gmra.mrb[12].mxu0 %vm256_vm3, %v1244_v35 }
 0x94c   :  { %2302 = vmatpush3.msra.mxu0 %v1246_v30  ;;  %2303 = vmatprep.mubr.msk.f32.mxu0 %vm2506_vm1, %v2502_v7 }
 0x94d   :  { %2410 = vmatprep.subr.bf16.mxu0 %v2505_v34 }
 0x9d6   :  { %v1405_v38 = vpop.xlane.xlu1 %1404 }
 0x9d7   :  { %2468 = vrcp.f32 %v1405_v38 }
 0x9e1   :  { %v2469_v39 = vpop.eup %2468 }
 0x9e2   :  { %v1407_v40 = vmul.f32 %v2469_v39, %v2465_v31 }
 0x9e4   :  { %2304 = vmatmul.mubr.msk.f32.vlgmr.msra.gmra.mrb[14].mxu0 %vm256_vm3, %v1407_v40 }
 0x9e5   :  { %2412 = vmatpush3.bf16.msra.mxu0 %v2411_v41  ;;  %2324 = vmatprep.mubr.msk.f32.mxu0 %vm2506_vm1, %v2502_v7 }
 0x9e6   :  { %2327 = vmatprep.subr.mxu0 %v2502_v7 }
 0x9e8   :  { %2325 = vmatmul.mubr.msk.f32.vlgmr.msra.gmra.mrb[16].mxu0 %vm181_vm2, %v1628_v42 }
 0x9e9   :  { %2329 = vmatprep.mubr.msk.f32.mxu0 %vm2506_vm1, %v2502_v7 }
 0xa1e   :  { %v1317_v43 = vpop.f32.mrb[12].mxu0 }
 0xa1f   :  { %v2293_v44 = vpop.f32.mrb[13].mxu0 }
 0xab7   :  { %v1477_v45 = vpop.f32.mrb[14].mxu0 }
 0xab8   :  { %v2305_v46 = vpop.f32.mrb[15].mxu0  ;;  %2311 = vmatmul.mubr.msk.f32.vlgmr.msra.gmra.mrb[14].mxu1 %vm181_vm2, %v1477_v45 }
 0xab9   :  { %2409 = vmatpush3.bf16.msra.mxu1 %v2724_v58  ;;  %2317 = vmatprep.mubr.msk.f32.mxu1 %vm2506_vm1, %v2502_v7 }
 0xaba   :  { %2413 = vmatprep.subr.bf16.mxu1 %v2505_v34 }
 0xabb   :  { %v1697_v47 = vpop.f32.mrb[16].mxu0 }
 0xabc   :  { %v1701_v48 = vmul.f32 0.25, %v1697_v47  ;;  %v2326_v50 = vpop.f32.mrb[17].mxu0 }
 0xabe   :  { %v1702_v51 = vadd.f32 %v2767_v6, %v1701_v48 }
 0xac0   :  { %2318 = vmatmul.mubr.msk.f32.vlgmr.msra.gmra.mrb[14].mxu1 %vm181_vm2, %v1317_v43  ;;  %v1703_v52 = vsel %vm256_vm3, %v1702_v51, -inf }
 0xac1   :  { %1704 = vmax.xlane.f32.xlu0 %v1703_v52  ;;  %2415 = vmatpush3.bf16.msra.mxu1 %v2737_v63 }
 0xac2   :  { %2336 = vmatprep.mubr.msk.f32.mxu1 %vm2506_vm1, %v2502_v7  ;;  %2346 = vmatprep.subr.mxu1 %v2502_v7 }
 0xad7   :  { %1864 = vrot.lane.b32.xlu0 %v2646_v49, %s2509_s19 }
 0xb4e   :  { %v1705_v53 = vpop.xlane.xlu0 %1704 }
 0xb4f   :  { %v1706_v54 = vsub.f32 %v1702_v51, %v1705_v53 }
 0xb51   :  { %v1707_v55 = vmul.f32 1.442695, %v1706_v54 }
 0xb52   :  { %v1865_v62 = vpop.permute.xlu0 %1864 }
 0xb53   :  { %2470 = vpow2.f32 %v1707_v55 }
 0xb5d   :  { %v2471_v56 = vpop.eup %2470 }
 0xb5e   :  { %v1709_v57 = vsel %vm256_vm3, %v2471_v56, 0.0 }
 0xb5f   :  { %1710 = vadd.xlane.f32.xlu1 %v1709_v57 }
 0xb70   :  { %1714 = vrot.lane.b32.xlu1 %v2646_v49, %s2510_s20 }
 0xbec   :  { %v1711_v58 = vpop.xlane.xlu1 %1710 }
 0xbed   :  { %2472 = vrcp.f32 %v1711_v58 }
 0xbf0   :  { %v1715_v59 = vpop.permute.xlu1 %1714 }
 0xbf1   :  { %2328 = vmatpush3.msra.mxu0 %v1715_v59 }
 0xbf2   :  { %2416 = vmatprep.subr.bf16.mxu0 %v2505_v34 }
 0xbf7   :  { %v2473_v60 = vpop.eup %2472 }
 0xbf8   :  { %v1713_v61 = vmul.f32 %v2473_v60, %v2471_v56 }
 0xbfa   :  { %2330 = vmatmul.mubr.msk.f32.vlgmr.msra.gmra.mrb[18].mxu0 %vm256_vm3, %v1713_v61 }
 0xbfb   :  { %2418 = vmatpush3.bf16.msra.mxu0 %v2411_v41  ;;  %2343 = vmatprep.mubr.msk.f32.mxu0 %vm2506_vm1, %v2502_v7 }
 0xbfe   :  { %2344 = vmatmul.mubr.msk.f32.vlgmr.msra.gmra.mrb[20].mxu0 %vm181_vm2, %v1865_v62 }
 0xccd   :  { %v1786_v63 = vpop.f32.mrb[18].mxu0 }
 0xcce   :  { %v2331_v0 = vpop.f32.mrb[19].mxu0  ;;  %2337 = vmatmul.mubr.msk.f32.vlgmr.msra.gmra.mrb[14].mxu1 %vm181_vm2, %v1786_v63 }
 0xccf   :  { %2347 = vmatpush3.msra.mxu1 %v1715_v59  ;;  %2348 = vmatprep.mubr.msk.f32.mxu1 %vm2506_vm1, %v2502_v7 }
 0xcd0   :  { %2419 = vmatprep.subr.bf16.mxu1 %v2505_v34 }
 0xcd1   :  { %v1934_v49 = vpop.f32.mrb[20].mxu0 }
 0xcd2   :  { %v1938_v1 = vmul.f32 0.25, %v1934_v49  ;;  %v2345_v2 = vpop.f32.mrb[21].mxu0 }
 0xcd4   :  { %v1939_v3 = vadd.f32 %v2767_v6, %v1938_v1 }
 0xcd6   :  { %v1940_v5 = vsel %vm256_vm3, %v1939_v3, -inf }
 0xcd7   :  { %1941 = vmax.xlane.f32.xlu1 %v1940_v5 }
 0xd64   :  { %v1942_v8 = vpop.xlane.xlu1 %1941 }
 0xd65   :  { %v1943_v9 = vsub.f32 %v1939_v3, %v1942_v8 }
 0xd67   :  { %v1944_v10 = vmul.f32 1.442695, %v1943_v9 }
 0xd69   :  { %2474 = vpow2.f32 %v1944_v10 }
 0xd73   :  { %v2475_v11 = vpop.eup %2474 }
 0xd74   :  { %v1946_v12 = vsel %vm256_vm3, %v2475_v11, 0.0 }
 0xd75   :  { %1947 = vadd.xlane.f32.xlu0 %v1946_v12 }
 0xe02   :  { %v1948_v13 = vpop.xlane.xlu0 %1947 }
 0xe03   :  { %2476 = vrcp.f32 %v1948_v13 }
 0xe0d   :  { %v2477_v14 = vpop.eup %2476 }
 0xe0e   :  { %v1950_v34 = vmul.f32 %v2477_v14, %v2475_v11 }
 0xe10   :  { %2349 = vmatmul.mubr.msk.f32.vlgmr.msra.gmra.mrb[16].mxu1 %vm256_vm3, %v1950_v34 }
 0xe11   :  { %2421 = vmatpush3.bf16.msra.mxu1 %v2760_v4  ;;  %2355 = vmatprep.mubr.msk.f32.mxu1 %vm2506_vm1, %v2502_v7 }
 0xee3   :  { %v2020_v6 = vpop.f32.mrb[16].mxu1 }
 0xee4   :  { %v2350_v15 = vpop.f32.mrb[17].mxu1  ;;  %2356 = vmatmul.mubr.msk.f32.vlgmr.msra.gmra.mrb[14].mxu1 %vm181_vm2, %v2020_v6 }
 0xfb7   :  { %v2093_v16 = vpop.f32.mrb[14].mxu1 }
 0xfb8   :  { %2098 = vst.msk [vmem:[#allocation2 + $0x8] sm:$0xff] %vm42_vm0, %v2093_v16  ;;  %v2357_v17 = vpop.f32.mrb[15].mxu1 }
 0xfb9   :  { %2489 = shalt.err (!%p2486_p4)
}
 0xfba   :  { %s2490_s16 = scalar_lea.hbm %s2853_s6, 256 }
 0xfbb   :  { %p2491_p5 = scmp.ne.s32.totalorder %s2853_s6, %s2490_s16  ;;  %p2494_p6 = scmp.lt.u32.totalorder %s2490_s16, %s2853_s6 }
 0xfbd   :  { %p2496_p7 = pnand %p2494_p6, %p2491_p5 }
 0xfbf   :  { %2499 = shalt.err (!%p2496_p7)
}
 0xfc0   :  { %s2512_s19 = smov 128   ;;  %s2513_s20 = smov 8  }
 0xfc1   :  { %2110 = dma.vmem_to_hbm [thread:$0]  %s2105_s5, 256, %s2853_s6, [#allocation3], %s2512_s19, %s2512_s19, %s2513_s20  }
 0xfc2   :  { %2500 = dma.done.wait [#allocation3], 256  }
 0xfc3   :  { %2501 = vsyncadd [#allocation3], 4294967040 }
 0xfc4   :  { %2114 = vsyncpa [#allocation3], 1 }

</bundles_post_ra>
